<compile_context>
chip_gen: v5e
topology: v5e:2x2
jax: 0.10.0
libtpu: 0.0.40
codegen_flags: <defaults>
</compile_context>

<pallas_src>
import jax
import jax.numpy as jnp
from jax.experimental import pallas as pl
from jax.experimental.pallas import tpu as pltpu


def _round_up(n, m):
    return ((n + m - 1) // m) * m


def _pick_tile_k(d_in_p):
    """Largest K tile (<= 4096) that evenly divides the padded contraction dim."""
    for cand in (4096, 2048, 1024, 512, 256, 128):
        if d_in_p % cand == 0:
            return cand
    return d_in_p  # unreachable: d_in_p is a multiple of 128


def _vmem_budget_bytes():
    """~80% of physical per-core VMEM (headroom for compiler scratch / sems)."""
    try:
        cap = pltpu.get_tpu_info().vmem_capacity_bytes
    except Exception:
        cap = 64 * (1 << 20)  # conservative (v7x-sized) fallback
    return int(cap * 0.8)


_SUBLANE = 16  # bf16 sublane packing (2 x 8)


def _batch_tiling(B):
    if B <= _SUBLANE:
        tile_b = _SUBLANE  # too small to split usefully
    else:
        # >= 2 grid steps so v7x megacore can shard the batch; cap tile at 256.
        tile_b = min(256, _round_up((B + 1) // 2, _SUBLANE))
    return tile_b, _round_up(B, tile_b)


# ----------------------------------------------------------------------------
# Kernels (K-tiled first matmul, f32 accumulator, finalize at k == last)
# ----------------------------------------------------------------------------
def _fused_kernel(x_ref, wf_ref, bf_ref, w2_ref, b2_ref, out_ref, acc_ref):
    """out = relu(x @ W_f + b_f) @ W2 + b2   (two MXU matmuls)."""
    k = pl.program_id(1)

    @pl.when(k == 0)
    def _():
        acc_ref[...] = jnp.zeros_like(acc_ref)

    acc_ref[...] += jnp.dot(x_ref[...], wf_ref[...],
                            preferred_element_type=jnp.float32)

    @pl.when(k == pl.num_programs(1) - 1)
    def _():
        h = jnp.maximum(acc_ref[...] + bf_ref[...], 0.0)
        out = jnp.dot(h.astype(w2_ref.dtype), w2_ref[...],
                      preferred_element_type=jnp.float32)
        out_ref[...] = (out + b2_ref[...]).astype(out_ref.dtype)


def _unfused_kernel(x_ref, we_ref, be_ref, w1_ref, b1_ref, w2_ref, b2_ref,
                    out_ref, acc_ref):
    """out = relu((x @ W_enc + b_enc) @ W1' + b1') @ W2 + b2  (three matmuls).
    Used when hidden > D_cat so the dominant weight is not inflated by fusion."""
    k = pl.program_id(1)

    @pl.when(k == 0)
    def _():
        acc_ref[...] = jnp.zeros_like(acc_ref)

    acc_ref[...] += jnp.dot(x_ref[...], we_ref[...],
                            preferred_element_type=jnp.float32)

    @pl.when(k == pl.num_programs(1) - 1)
    def _():
        concat = (acc_ref[...] + be_ref[...]).astype(w1_ref.dtype)
        h = jnp.dot(concat, w1_ref[...], preferred_element_type=jnp.float32)
        h = jnp.maximum(h + b1_ref[...], 0.0)
        out = jnp.dot(h.astype(w2_ref.dtype), w2_ref[...],
                      preferred_element_type=jnp.float32)
        out_ref[...] = (out + b2_ref[...]).astype(out_ref.dtype)


# ----------------------------------------------------------------------------
# Parameter prep: BN folding + (conditional) linear fusion + padding + bf16
# ----------------------------------------------------------------------------
def fold_and_pad_params(params, eps=1e-5, compute_dtype=jnp.bfloat16):
    # 1) Fold eval-mode BatchNorm1d into Linear-1 (exact constant folding).
    scale = params["bn_gamma"] * jax.lax.rsqrt(params["bn_var"] + eps)      # [1,H]
    w1f = params["w1"] * scale                                              # [D_cat,H]
    b1f = (params["b1"] - params["bn_mean"]) * scale + params["bn_beta"]    # [1,H]

    w_enc, b_enc = params["w_enc"], params["b_enc"]
    w2, b2 = params["w2"], params["b2"]
    d_in, d_cat = w_enc.shape
    hidden = w1f.shape[1]
    nc = w2.shape[1]

    # Lane-dim rounding: 128 minimum; multiples of 256 once the real dim
    # exceeds 128 (feeds the 256-wide MXU on v6e/v7x; harmless on v5e).
    def lane_pad(n):
        return _round_up(n, 256) if n > 128 else 128

    d_in_p = _round_up(d_in, 128)
    h_p = lane_pad(hidden)
    nc_p = _round_up(nc, 128)

    # 2) Only fuse encoder @ Linear1 when it does not grow the dominant weight.
    if hidden <= d_cat:
        wf = (w_enc @ w1f).astype(jnp.float32)          # fuse in f32, cast once
        bf = (b_enc @ w1f + b1f).astype(jnp.float32)
        wf_p = jnp.zeros((d_in_p, h_p), compute_dtype).at[:d_in, :hidden].set(
            wf.astype(compute_dtype))
        bf_p = jnp.zeros((1, h_p), jnp.float32).at[:, :hidden].set(bf)
        w2_p = jnp.zeros((h_p, nc_p), compute_dtype).at[:hidden, :nc].set(
            w2.astype(compute_dtype))
        b2_p = jnp.zeros((1, nc_p), jnp.float32).at[:, :nc].set(b2)
        return dict(fused=True, wf=wf_p, bf=bf_p, w2=w2_p, b2=b2_p,
                    d_in=d_in, d_in_p=d_in_p, h_p=h_p, nc_p=nc_p,
                    num_classes=nc, compute_dtype=compute_dtype)

    dc_p = lane_pad(d_cat)
    we_p = jnp.zeros((d_in_p, dc_p), compute_dtype).at[:d_in, :d_cat].set(
        w_enc.astype(compute_dtype))
    be_p = jnp.zeros((1, dc_p), jnp.float32).at[:, :d_cat].set(b_enc)
    w1_p = jnp.zeros((dc_p, h_p), compute_dtype).at[:d_cat, :hidden].set(
        w1f.astype(compute_dtype))
    b1_p = jnp.zeros((1, h_p), jnp.float32).at[:, :hidden].set(b1f)
    w2_p = jnp.zeros((h_p, nc_p), compute_dtype).at[:hidden, :nc].set(
        w2.astype(compute_dtype))
    b2_p = jnp.zeros((1, nc_p), jnp.float32).at[:, :nc].set(b2)
    return dict(fused=False, we=we_p, be=be_p, w1=w1_p, b1=b1_p,
                w2=w2_p, b2=b2_p,
                d_in=d_in, d_in_p=d_in_p, dc_p=dc_p, h_p=h_p, nc_p=nc_p,
                num_classes=nc, compute_dtype=compute_dtype)


# ----------------------------------------------------------------------------
# Forward wrapper
# ----------------------------------------------------------------------------
def comp_model_forward(x, fp):
    """x: [B, C, H, W] float32 (NCHW). Returns logits [B, num_classes] f32."""
    B = x.shape[0]
    x_flat = x.reshape(B, -1)                    # row-major flatten (== torch)
    d_in = x_flat.shape[1]
    assert d_in == fp["d_in"]
    d_in_p, h_p, nc_p = fp["d_in_p"], fp["h_p"], fp["nc_p"]
    nc = fp["num_classes"]
    cdt = fp["compute_dtype"]
    csize = jnp.dtype(cdt).itemsize

    tile_b, b_pad = _batch_tiling(B)
    tile_k = _pick_tile_k(d_in_p)

    # bf16 activations halve x DMA bytes; f32 accumulation stays in-kernel.
    x_c = x_flat.astype(cdt)
    if b_pad != B or d_in_p != d_in:
        # Explicit zero pad: never rely on OOB block reads for the K tail.
        x_c = jnp.pad(x_c, ((0, b_pad - B), (0, d_in_p - d_in)))

    grid = (b_pad // tile_b, d_in_p // tile_k)

    # Weights with constant index maps never change across grid steps ->
    # single-buffer them (Buffered(1)) to save VMEM; the big K-tiled weight
    # and x stay double-buffered so DMA overlaps the MXU.
    if fp["fused"]:
        kernel = _fused_kernel
        weights = (fp["wf"], fp["bf"], fp["w2"], fp["b2"])
        w_specs = [
            pl.BlockSpec((tile_k, h_p), lambda i, k: (k, 0)),            # W_f
            pl.BlockSpec((1, h_p), lambda i, k: (0, 0),
                         pipeline_mode=pl.Buffered(1)),                  # b_f
            pl.BlockSpec((h_p, nc_p), lambda i, k: (0, 0),
                         pipeline_mode=pl.Buffered(1)),                  # W2
            pl.BlockSpec((1, nc_p), lambda i, k: (0, 0),
                         pipeline_mode=pl.Buffered(1)),                  # b2
        ]
        mid_p = h_p
        flops = 2 * b_pad * d_in_p * h_p + 2 * b_pad * h_p * nc_p
    else:
        kernel = _unfused_kernel
        dc_p = fp["dc_p"]
        weights = (fp["we"], fp["be"], fp["w1"], fp["b1"], fp["w2"], fp["b2"])
        w_specs = [
            pl.BlockSpec((tile_k, dc_p), lambda i, k: (k, 0)),           # W_enc
            pl.BlockSpec((1, dc_p), lambda i, k: (0, 0),
                         pipeline_mode=pl.Buffered(1)),                  # b_enc
            pl.BlockSpec((dc_p, h_p), lambda i, k: (0, 0),
                         pipeline_mode=pl.Buffered(1)),                  # W1'
            pl.BlockSpec((1, h_p), lambda i, k: (0, 0),
                         pipeline_mode=pl.Buffered(1)),                  # b1'
            pl.BlockSpec((h_p, nc_p), lambda i, k: (0, 0),
                         pipeline_mode=pl.Buffered(1)),                  # W2
            pl.BlockSpec((1, nc_p), lambda i, k: (0, 0),
                         pipeline_mode=pl.Buffered(1)),                  # b2
        ]
        mid_p = dc_p
        flops = (2 * b_pad * d_in_p * dc_p + 2 * b_pad * dc_p * h_p
                 + 2 * b_pad * h_p * nc_p)

    weight_bytes = sum(int(w.size) * jnp.dtype(w.dtype).itemsize for w in weights)
    bytes_accessed = b_pad * d_in_p * csize + weight_bytes + b_pad * nc_p * 4

    # Per-step VMEM: x + big-weight tiles double-buffered, small weights
    # resident single-buffered, output double-buffered, f32 accumulator.
    needed = (2 * tile_b * tile_k * csize
              + 2 * tile_k * mid_p * csize
              + (weight_bytes - d_in_p * mid_p * csize)   # resident small weights
              + 2 * tile_b * nc_p * 4
              + tile_b * mid_p * 4)
    vmem_limit = int(min(_vmem_budget_bytes(), needed + (16 << 20)))

    out = pl.pallas_call(
        kernel,
        out_shape=jax.ShapeDtypeStruct((b_pad, nc_p), jnp.float32),
        grid=grid,
        in_specs=[pl.BlockSpec((tile_b, tile_k), lambda i, k: (i, k))] + w_specs,
        out_specs=pl.BlockSpec((tile_b, nc_p), lambda i, k: (i, 0)),
        scratch_shapes=[pltpu.VMEM((tile_b, mid_p), jnp.float32)],
        compiler_params=pltpu.CompilerParams(
            dimension_semantics=("parallel", "arbitrary"),
            vmem_limit_bytes=vmem_limit,
        ),
        cost_estimate=pl.CostEstimate(flops=flops, transcendentals=0,
                                      bytes_accessed=bytes_accessed),
    )(x_c, *weights)

    return out[:B, :nc]


# ----------------------------------------------------------------------------
# Deterministic "PyTorch-equivalent" parameters (no checkpoint) + f32 reference
# ----------------------------------------------------------------------------
def make_params(key, d_in, encoder_output_dims, hidden_dim, num_classes):
    keys = jax.random.split(key, len(encoder_output_dims) + 6)
    w_blocks, b_blocks = [], []
    for i, od in enumerate(encoder_output_dims):
        kw, kb = jax.random.split(keys[i], 2)
        w_blocks.append(jax.random.normal(kw, (d_in, od), jnp.float32) * 0.02)
        b_blocks.append(jax.random.normal(kb, (1, od), jnp.float32) * 0.01)
    w_enc = jnp.concatenate(w_blocks, axis=1)       # [D_in, D_cat]
    b_enc = jnp.concatenate(b_blocks, axis=1)       # [1, D_cat]
    d_cat = w_enc.shape[1]

    k1, k2, k3, k4, k5, k6 = keys[len(encoder_output_dims):]
    w1 = jax.random.normal(k1, (d_cat, hidden_dim), jnp.float32) * 0.05
    b1 = jax.random.normal(k2, (1, hidden_dim), jnp.float32) * 0.01
    bn_gamma = jnp.ones((1, hidden_dim), jnp.float32) * 1.1
    bn_beta = jnp.full((1, hidden_dim), 0.05, jnp.float32)
    bn_mean = jax.random.normal(k3, (1, hidden_dim), jnp.float32) * 0.1
    bn_var = jnp.abs(jax.random.normal(k4, (1, hidden_dim), jnp.float32)) + 0.5
    w2 = jax.random.normal(k5, (hidden_dim, num_classes), jnp.float32) * 0.1
    b2 = jax.random.normal(k6, (1, num_classes), jnp.float32) * 0.01
    return dict(w_enc=w_enc, b_enc=b_enc, w1=w1, b1=b1,
                bn_gamma=bn_gamma, bn_beta=bn_beta,
                bn_mean=bn_mean, bn_var=bn_var, w2=w2, b2=b2)


def reference_forward(x, raw, eps=1e-5):
    """Pure-JAX f32 reference with the ORIGINAL (unfused, unpadded) params."""
    B = x.shape[0]
    xf = x.reshape(B, -1)
    concat = xf @ raw["w_enc"] + raw["b_enc"]
    h = concat @ raw["w1"] + raw["b1"]
    h = (h - raw["bn_mean"]) * jax.lax.rsqrt(raw["bn_var"] + eps)
    h = h * raw["bn_gamma"] + raw["bn_beta"]
    h = jnp.maximum(h, 0.0)
    return h @ raw["w2"] + raw["b2"]


if __name__ == "__main__":
    key = jax.random.PRNGKey(0)
    kx, kp1, kp2 = jax.random.split(key, 3)

    B, C, H, W = 2, 4, 16, 16               # NCHW input; D_in = 1024
    num_classes = 4
    x = jax.random.normal(kx, (B, C, H, W), jnp.float32)
    d_in = C * H * W

    # --- fused path (hidden <= sum(encoder output dims)) -------------------
    raw1 = make_params(kp1, d_in, (24, 40), hidden_dim=32,
                       num_classes=num_classes)
    fp1 = fold_and_pad_params(raw1)
    out1 = jax.block_until_ready(comp_model_forward(x, fp1))
    ref1 = reference_forward(x, raw1)
    assert out1.shape == (B, num_classes)
    assert jnp.allclose(out1, ref1, atol=2e-2, rtol=2e-2), (
        float(jnp.max(jnp.abs(out1 - ref1))))

    # --- factored path (hidden > sum(encoder output dims)) -----------------
    raw2 = make_params(kp2, d_in, (24, 40), hidden_dim=160,
                       num_classes=num_classes)
    fp2 = fold_and_pad_params(raw2)
    out2 = jax.block_until_ready(comp_model_forward(x, fp2))
    ref2 = reference_forward(x, raw2)
    assert out2.shape == (B, num_classes)
    assert jnp.allclose(out2, ref2, atol=2e-2, rtol=2e-2), (
        float(jnp.max(jnp.abs(out2 - ref2))))

    print("KERNEL_OK")
</pallas_src>

<mosaic_0001>
module attributes {stable_mosaic.version = 11 : i64} {
  func.func @_fused_kernel(%arg0: i32, %arg1: i32, %arg2: memref<16x1024xbf16, #tpu.memory_space<vmem>>, %arg3: memref<1024x128xbf16, #tpu.memory_space<vmem>>, %arg4: memref<1x128xf32, #tpu.memory_space<vmem>>, %arg5: memref<128x128xbf16, #tpu.memory_space<vmem>>, %arg6: memref<1x128xf32, #tpu.memory_space<vmem>>, %arg7: memref<16x128xf32, #tpu.memory_space<vmem>>, %arg8: memref<16x128xf32, #tpu.memory_space<vmem>>) attributes {dimension_semantics = [#tpu.dimension_semantics<parallel>, #tpu.dimension_semantics<arbitrary>], iteration_bounds = array<i64: 1, 1>, scalar_prefetch = 0 : i64, scratch_operands = 1 : i64, tpu.core_type = #tpu.core_type<tc>, window_params = [{transform_indices = @transform_0, window_bounds = array<i64: 16, 1024>}, {transform_indices = @transform_1, window_bounds = array<i64: 1024, 128>}, {pipeline_mode = #tpu.pipeline_mode<synchronous>, transform_indices = @transform_2, window_bounds = array<i64: 1, 128>}, {pipeline_mode = #tpu.pipeline_mode<synchronous>, transform_indices = @transform_3, window_bounds = array<i64: 128, 128>}, {pipeline_mode = #tpu.pipeline_mode<synchronous>, transform_indices = @transform_4, window_bounds = array<i64: 1, 128>}, {transform_indices = @transform_5, window_bounds = array<i64: 16, 128>}]} {
    %c0_i32 = arith.constant 0 : i32
    %0 = arith.cmpi eq, %arg1, %c0_i32 : i32
    %1 = arith.extui %0 : i1 to i32
    %c0_i32_0 = arith.constant 0 : i32
    %2 = arith.cmpi ne, %1, %c0_i32_0 : i32
    scf.if %2 {
      %cst_10 = arith.constant 0.000000e+00 : f32
      %12 = vector.broadcast %cst_10 : f32 to vector<16x128xf32>
      %c0_11 = arith.constant 0 : index
      %c0_12 = arith.constant 0 : index
      %13 = vector.load %arg8[%c0_11, %c0_12] : memref<16x128xf32, #tpu.memory_space<vmem>>, vector<16x128xf32>
      tpu.vector_store %arg8[%c0_11, %c0_12], %12 {strides = array<i32>} : memref<16x128xf32, #tpu.memory_space<vmem>>, vector<16x128xf32>,
    } else {
    }
    %c0 = arith.constant 0 : index
    %c0_1 = arith.constant 0 : index
    %3 = vector.load %arg8[%c0, %c0_1] : memref<16x128xf32, #tpu.memory_space<vmem>>, vector<16x128xf32>
    %c0_2 = arith.constant 0 : index
    %c0_3 = arith.constant 0 : index
    %4 = vector.load %arg2[%c0_2, %c0_3] : memref<16x1024xbf16, #tpu.memory_space<vmem>>, vector<16x1024xbf16>
    %c0_4 = arith.constant 0 : index
    %c0_5 = arith.constant 0 : index
    %5 = vector.load %arg3[%c0_4, %c0_5] : memref<1024x128xbf16, #tpu.memory_space<vmem>>, vector<1024x128xbf16>
    %cst = arith.constant dense<0.000000e+00> : vector<16x128xf32>
    %6 = tpu.matmul %4, %5, %cst {dimension_numbers = #tpu.dot_dimension_numbers<[1], [0], [0], [1], [0, 0, 1, 1], [], []>} : vector<16x1024xbf16>, vector<1024x128xbf16>, vector<16x128xf32> -> vector<16x128xf32>
    %7 = arith.addf %3, %6 : vector<16x128xf32>
    %c0_6 = arith.constant 0 : index
    %c0_7 = arith.constant 0 : index
    %8 = vector.load %arg8[%c0_6, %c0_7] : memref<16x128xf32, #tpu.memory_space<vmem>>, vector<16x128xf32>
    tpu.vector_store %arg8[%c0_6, %c0_7], %7 {strides = array<i32>} : memref<16x128xf32, #tpu.memory_space<vmem>>, vector<16x128xf32>,
    %c0_i32_8 = arith.constant 0 : i32
    %9 = arith.cmpi eq, %arg1, %c0_i32_8 : i32
    %10 = arith.extui %9 : i1 to i32
    %c0_i32_9 = arith.constant 0 : i32
    %11 = arith.cmpi ne, %10, %c0_i32_9 : i32
    scf.if %11 {
      %c0_10 = arith.constant 0 : index
      %c0_11 = arith.constant 0 : index
      %12 = vector.load %arg8[%c0_10, %c0_11] : memref<16x128xf32, #tpu.memory_space<vmem>>, vector<16x128xf32>
      %c0_12 = arith.constant 0 : index
      %c0_13 = arith.constant 0 : index
      %13 = vector.load %arg4[%c0_12, %c0_13] : memref<1x128xf32, #tpu.memory_space<vmem>>, vector<1x128xf32>
      %14 = vector.broadcast %13 : vector<1x128xf32> to vector<16x128xf32>
      %15 = arith.addf %12, %14 : vector<16x128xf32>
      %cst_14 = arith.constant 0.000000e+00 : f32
      %16 = vector.broadcast %cst_14 : f32 to vector<16x128xf32>
      %17 = arith.maximumf %15, %16 : vector<16x128xf32>
      %18 = arith.truncf %17 : vector<16x128xf32> to vector<16x128xbf16>
      %c0_15 = arith.constant 0 : index
      %c0_16 = arith.constant 0 : index
      %19 = vector.load %arg5[%c0_15, %c0_16] : memref<128x128xbf16, #tpu.memory_space<vmem>>, vector<128x128xbf16>
      %cst_17 = arith.constant dense<0.000000e+00> : vector<16x128xf32>
      %20 = tpu.matmul %18, %19, %cst_17 {dimension_numbers = #tpu.dot_dimension_numbers<[1], [0], [0], [1], [0, 0, 1, 1], [], []>} : vector<16x128xbf16>, vector<128x128xbf16>, vector<16x128xf32> -> vector<16x128xf32>
      %c0_18 = arith.constant 0 : index
      %c0_19 = arith.constant 0 : index
      %21 = vector.load %arg6[%c0_18, %c0_19] : memref<1x128xf32, #tpu.memory_space<vmem>>, vector<1x128xf32>
      %22 = vector.broadcast %21 : vector<1x128xf32> to vector<16x128xf32>
      %23 = arith.addf %20, %22 : vector<16x128xf32>
      %c0_20 = arith.constant 0 : index
      %c0_21 = arith.constant 0 : index
      %24 = vector.load %arg7[%c0_20, %c0_21] : memref<16x128xf32, #tpu.memory_space<vmem>>, vector<16x128xf32>
      tpu.vector_store %arg7[%c0_20, %c0_21], %23 {strides = array<i32>} : memref<16x128xf32, #tpu.memory_space<vmem>>, vector<16x128xf32>,
    } else {
    }
    return
  }
  func.func @transform_0(%arg0: i32, %arg1: i32) -> (i32, i32) {
    %c0_i32 = arith.constant 0 : i32
    return %arg0, %arg1 : i32, i32
  }
  func.func @transform_1(%arg0: i32, %arg1: i32) -> (i32, i32) {
    %c0_i32 = arith.constant 0 : i32
    %c0_i32_0 = arith.constant 0 : i32
    return %arg1, %c0_i32 : i32, i32
  }
  func.func @transform_2(%arg0: i32, %arg1: i32) -> (i32, i32) {
    %c0_i32 = arith.constant 0 : i32
    %c0_i32_0 = arith.constant 0 : i32
    %c0_i32_1 = arith.constant 0 : i32
    return %c0_i32, %c0_i32_0 : i32, i32
  }
  func.func @transform_3(%arg0: i32, %arg1: i32) -> (i32, i32) {
    %c0_i32 = arith.constant 0 : i32
    %c0_i32_0 = arith.constant 0 : i32
    %c0_i32_1 = arith.constant 0 : i32
    return %c0_i32, %c0_i32_0 : i32, i32
  }
  func.func @transform_4(%arg0: i32, %arg1: i32) -> (i32, i32) {
    %c0_i32 = arith.constant 0 : i32
    %c0_i32_0 = arith.constant 0 : i32
    %c0_i32_1 = arith.constant 0 : i32
    return %c0_i32, %c0_i32_0 : i32, i32
  }
  func.func @transform_5(%arg0: i32, %arg1: i32) -> (i32, i32) {
    %c0_i32 = arith.constant 0 : i32
    %c0_i32_0 = arith.constant 0 : i32
    return %arg0, %c0_i32 : i32, i32
  }
}

</mosaic_0001>

<bundles_post_ra>
// kernel: tpu_custom_call.1
= control target key start
LH: loop header
LB: loop body
LE: loop exit
PB: predicated region body
PF: predicated region fallthrough
CT: control target
= control target key end

     0   :  { %10 = vsyncpa [#allocation4], 0  ;;  %s1442_s0 = inlined_call_operand.hbm [shape: bf16[16,1024], index: 0, kind: input, shape index: {}]   ;;  %s1443_s1 = inlined_call_operand.hbm [shape: bf16[1024,128], index: 1, kind: input, shape index: {}]   ;;  %s1444_s2 = inlined_call_operand.vmem [shape: f32[1,128], index: 2, kind: input, shape index: {}]   ;;  %s1445_s3 = inlined_call_operand.hbm [shape: bf16[128,128], index: 3, kind: input, shape index: {}]   ;;  %s1446_s4 = inlined_call_operand.vmem [shape: f32[1,128], index: 4, kind: input, shape index: {}]   ;;  %s1447_s5 = inlined_call_operand.hbm [shape: f32[16,128], index: 5, kind: output, shape index: {}]  }
   0x1   :  { %11 = vsyncpa [#allocation7], 0  ;;  %s30_s20 = sshll.u32 %s1443_s1, 4  ;;  %s31_s20 = int_to_ptr.hbm [resolvable:$true] %s30_s20 }
   0x2   :  { %12 = vsyncpa [#allocation5], 0  ;;  %s1384_s21 = smov [#allocation6]   ;;  %s17_s25 = sshll.u32 %s1442_s0, 4  ;;  %s18_s25 = int_to_ptr.hbm [resolvable:$true] %s17_s25 }
   0x3   :  { %s32_s22 = sshll.u32 %s1384_s21, 4  ;;  %s1385_s26 = smov 64   ;;  %s33_s22 = int_to_ptr.vmem [resolvable:$true] %s32_s22 }
   0x4   :  { %s1386_s27 = smov 4   ;;  %s1387_s28 = smov [#allocation3]  }
   0x5   :  { %38 = dma.hbm_to_vmem [thread:$0]  %s31_s20, 8192, %s33_s22, [#allocation7], %s1385_s26, %s1385_s26, %s1386_s27  }
   0x6   :  { %s19_s29 = sshll.u32 %s1387_s28, 4  ;;  %s1388_s30 = smov 512   ;;  %s20_s29 = int_to_ptr.vmem [resolvable:$true] %s19_s29 }
   0x7   :  { %s1389_s6 = smov 32   ;;  %s45_s8 = sshll.u32 %s1445_s3, 4  ;;  %s46_s8 = int_to_ptr.hbm [resolvable:$true] %s45_s8 }
   0x8   :  { %25 = dma.hbm_to_vmem [thread:$0]  %s18_s25, 1024, %s20_s29, [#allocation4], %s1388_s30, %s1388_s30, %s1389_s6  }
   0x9   :  { %s1390_s9 = smov [#allocation8]  }
   0xa   :  { %s47_s10 = sshll.u32 %s1390_s9, 4  ;;  %s48_s10 = int_to_ptr.vmem [resolvable:$true] %s47_s10 }
   0xb   :  { %53 = dma.hbm_to_vmem [thread:$0]  %s46_s8, 1024, %s48_s10, [#allocation7], %s1385_s26, %s1385_s26, %s1386_s27  }
   0xc   :  { %1378 = dma.done.wait [#allocation4], 1024  }
   0xd   :  { %1379 = vsyncadd [#allocation4], 4294966272 }
   0xe   :  { %1380 = dma.done.wait [#allocation7], 9216  }
   0xf   :  { %1381 = vsyncadd [#allocation7], 4294958080  ;;  %v1205_v0 = vld [vmem:[#allocation6 + $0x38] sm:$0xff]  ;;  %v1204_v4 = vld [vmem:[#allocation6 + $0x30] sm:$0xff]  ;;  %s1391_s13 = smov [#allocation9]   ;;  %s856_s16 = sshll.u32 %s1447_s5, 4  ;;  %s857_s16 = int_to_ptr.hbm [resolvable:$true] %s856_s16 }
  0x10   :  { %v1213_v1 = vld [vmem:[#allocation6 + $0x78] sm:$0xff]  ;;  %636 = vmatpush.bf16.msra.mxu0 %v1205_v0  ;;  %v1212_v5 = vld [vmem:[#allocation6 + $0x70] sm:$0xff]  ;;  %v1203_v8 = vld [vmem:[#allocation6 + $0x28] sm:$0xff]  ;;  %s1392_s17 = smov 128   ;;  %s1393_s18 = smov 8  }
  0x11   :  { %v1221_v2 = vld [vmem:[#allocation6 + $0xb8] sm:$0xff]  ;;  %650 = vmatpush.bf16.msra.mxu1 %v1213_v1  ;;  %v1220_v6 = vld [vmem:[#allocation6 + $0xb0] sm:$0xff]  ;;  %v1211_v9 = vld [vmem:[#allocation6 + $0x68] sm:$0xff] }
  0x12   :  { %v1229_v3 = vld [vmem:[#allocation6 + $0xf8] sm:$0xff]  ;;  %664 = vmatpush.bf16.msra.mxu2 %v1221_v2  ;;  %v1228_v7 = vld [vmem:[#allocation6 + $0xf0] sm:$0xff]  ;;  %v1219_v10 = vld [vmem:[#allocation6 + $0xa8] sm:$0xff] }
  0x13   :  { %678 = vmatpush.bf16.msra.mxu3 %v1229_v3  ;;  %v1227_v11 = vld [vmem:[#allocation6 + $0xe8] sm:$0xff]  ;;  %v1202_v12 = vld [vmem:[#allocation6 + $0x20] sm:$0xff]  ;;  %v1201_v16 = vld [vmem:[#allocation6 + $0x18] sm:$0xff] }
  0x14   :  { %637 = vmatpush.bf16.msra.mxu0 %v1204_v4  ;;  %v1210_v13 = vld [vmem:[#allocation6 + $0x60] sm:$0xff]  ;;  %v1209_v17 = vld [vmem:[#allocation6 + $0x58] sm:$0xff]  ;;  %v1200_v20 = vld [vmem:[#allocation6 + $0x10] sm:$0xff] }
  0x15   :  { %651 = vmatpush.bf16.msra.mxu1 %v1212_v5  ;;  %v1218_v14 = vld [vmem:[#allocation6 + $0xa0] sm:$0xff]  ;;  %v1217_v18 = vld [vmem:[#allocation6 + $0x98] sm:$0xff]  ;;  %v1208_v21 = vld [vmem:[#allocation6 + $0x50] sm:$0xff] }
  0x16   :  { %665 = vmatpush.bf16.msra.mxu2 %v1220_v6  ;;  %v1226_v15 = vld [vmem:[#allocation6 + $0xe0] sm:$0xff]  ;;  %v1225_v19 = vld [vmem:[#allocation6 + $0xd8] sm:$0xff]  ;;  %v1216_v22 = vld [vmem:[#allocation6 + $0x90] sm:$0xff] }
  0x17   :  { %679 = vmatpush.bf16.msra.mxu3 %v1228_v7  ;;  %v1224_v23 = vld [vmem:[#allocation6 + $0xd0] sm:$0xff]  ;;  %v1199_v24 = vld [vmem:[#allocation6 + $0x8] sm:$0xff]  ;;  %v1198_v28 = vld [vmem:[#allocation6] sm:$0xff] }
  0x18   :  { %638 = vmatpush.bf16.msra.mxu0 %v1203_v8  ;;  %v1207_v25 = vld [vmem:[#allocation6 + $0x48] sm:$0xff]  ;;  %v1206_v29 = vld [vmem:[#allocation6 + $0x40] sm:$0xff]  ;;  %v1237_v32 = vld [vmem:[#allocation6 + $0x138] sm:$0xff] }
  0x19   :  { %652 = vmatpush.bf16.msra.mxu1 %v1211_v9  ;;  %v1215_v26 = vld [vmem:[#allocation6 + $0x88] sm:$0xff]  ;;  %v1214_v30 = vld [vmem:[#allocation6 + $0x80] sm:$0xff]  ;;  %v1245_v33 = vld [vmem:[#allocation6 + $0x178] sm:$0xff] }
  0x1a   :  { %666 = vmatpush.bf16.msra.mxu2 %v1219_v10  ;;  %v1223_v27 = vld [vmem:[#allocation6 + $0xc8] sm:$0xff]  ;;  %v1222_v31 = vld [vmem:[#allocation6 + $0xc0] sm:$0xff]  ;;  %v1253_v42 = vld [vmem:[#allocation6 + $0x1b8] sm:$0xff] }
  0x1b   :  { %680 = vmatpush.bf16.msra.mxu3 %v1227_v11  ;;  %v880_v34 = vld [vmem:[#allocation3 + $0x8] sm:$0xf]  ;;  %v1191_v36 = vld [vmem:[#allocation3 + $0xc] sm:$0xf]  ;;  %v872_v38 = vld [vmem:[#allocation3] sm:$0xf] }
  0x1c   :  { %639 = vmatpush.bf16.msra.mxu0 %v1202_v12  ;;  %v1195_v35 = vld [vmem:[#allocation3 + $0x24] sm:$0xf0]  ;;  %v882_v37 = vld [vmem:[#allocation3 + $0x28] sm:$0xf0]  ;;  %v1194_v39 = vld [vmem:[#allocation3 + $0x1c] sm:$0xf0] }
  0x1d   :  { %653 = vmatpush.bf16.msra.mxu1 %v1210_v13  ;;  %v1190_v40 = vld [vmem:[#allocation3 + $0x4] sm:$0xf]  ;;  %v1261_v43 = vld [vmem:[#allocation6 + $0x1f8] sm:$0xff]  ;;  %v881_v44 = vor.u32 %v1195_v35, %v880_v34  ;;  %v885_v45 = vor.u32 %v1191_v36, %v882_v37  ;;  %v873_v46 = vor.u32 %v1194_v39, %v872_v38  ;;  %v1236_v48 = vld [vmem:[#allocation6 + $0x130] sm:$0xff] }
  0x1e   :  { %667 = vmatpush.bf16.msra.mxu2 %v1218_v14  ;;  %v874_v41 = vld [vmem:[#allocation3 + $0x20] sm:$0xf0]  ;;  %v1244_v49 = vld [vmem:[#allocation6 + $0x170] sm:$0xff]  ;;  %v1235_v52 = vld [vmem:[#allocation6 + $0x128] sm:$0xff] }
  0x1f   :  { %681 = vmatpush.bf16.msra.mxu3 %v1226_v15  ;;  %v877_v47 = vor.u32 %v1190_v40, %v874_v41  ;;  %v1252_v50 = vld [vmem:[#allocation6 + $0x1b0] sm:$0xff]  ;;  %v1243_v53 = vld [vmem:[#allocation6 + $0x168] sm:$0xff]  ;;  %v1234_v56 = vld [vmem:[#allocation6 + $0x120] sm:$0xff] }
  0x20   :  { %640 = vmatpush.bf16.msra.mxu0 %v1201_v16  ;;  %v1260_v51 = vld [vmem:[#allocation6 + $0x1f0] sm:$0xff]  ;;  %v1251_v54 = vld [vmem:[#allocation6 + $0x1a8] sm:$0xff]  ;;  %v1242_v57 = vld [vmem:[#allocation6 + $0x160] sm:$0xff] }
  0x21   :  { %654 = vmatpush.bf16.msra.mxu1 %v1209_v17  ;;  %v1259_v55 = vld [vmem:[#allocation6 + $0x1e8] sm:$0xff]  ;;  %v1250_v58 = vld [vmem:[#allocation6 + $0x1a0] sm:$0xff]  ;;  %v1233_v60 = vld [vmem:[#allocation6 + $0x118] sm:$0xff] }
  0x22   :  { %668 = vmatpush.bf16.msra.mxu2 %v1217_v18  ;;  %v1258_v59 = vld [vmem:[#allocation6 + $0x1e0] sm:$0xff]  ;;  %v1241_v61 = vld [vmem:[#allocation6 + $0x158] sm:$0xff]  ;;  %v1232_v0 = vld [vmem:[#allocation6 + $0x110] sm:$0xff] }
  0x23   :  { %682 = vmatpush.bf16.msra.mxu3 %v1225_v19  ;;  %v1249_v62 = vld [vmem:[#allocation6 + $0x198] sm:$0xff]  ;;  %v1240_v1 = vld [vmem:[#allocation6 + $0x150] sm:$0xff]  ;;  %v1231_v4 = vld [vmem:[#allocation6 + $0x108] sm:$0xff] }
  0x24   :  { %641 = vmatpush.bf16.msra.mxu0 %v1200_v20  ;;  %v1257_v63 = vld [vmem:[#allocation6 + $0x1d8] sm:$0xff]  ;;  %v1248_v2 = vld [vmem:[#allocation6 + $0x190] sm:$0xff]  ;;  %v1239_v5 = vld [vmem:[#allocation6 + $0x148] sm:$0xff] }
  0x25   :  { %655 = vmatpush.bf16.msra.mxu1 %v1208_v21  ;;  %v1256_v3 = vld [vmem:[#allocation6 + $0x1d0] sm:$0xff]  ;;  %v1247_v6 = vld [vmem:[#allocation6 + $0x188] sm:$0xff]  ;;  %v1230_v8 = vld [vmem:[#allocation6 + $0x100] sm:$0xff] }
  0x26   :  { %669 = vmatpush.bf16.msra.mxu2 %v1216_v22  ;;  %v1255_v7 = vld [vmem:[#allocation6 + $0x1c8] sm:$0xff]  ;;  %v1238_v9 = vld [vmem:[#allocation6 + $0x140] sm:$0xff]  ;;  %v888_v12 = vld [vmem:[#allocation3 + $0x10] sm:$0xf] }
  0x27   :  { %683 = vmatpush.bf16.msra.mxu3 %v1224_v23  ;;  %v1246_v10 = vld [vmem:[#allocation6 + $0x180] sm:$0xff]  ;;  %v1196_v13 = vld [vmem:[#allocation3 + $0x2c] sm:$0xf0]  ;;  %v1192_v14 = vld [vmem:[#allocation3 + $0x14] sm:$0xf] }
  0x28   :  { %642 = vmatpush.bf16.msra.mxu0 %v1199_v24  ;;  %v1254_v11 = vld [vmem:[#allocation6 + $0x1c0] sm:$0xff]  ;;  %v890_v15 = vld [vmem:[#allocation3 + $0x30] sm:$0xf0]  ;;  %v896_v16 = vld [vmem:[#allocation3 + $0x18] sm:$0xf]  ;;  %v889_v20 = vor.u32 %v1196_v13, %v888_v12 }
  0x29   :  { %656 = vmatpush.bf16.msra.mxu1 %v1207_v25  ;;  %v1197_v17 = vld [vmem:[#allocation3 + $0x34] sm:$0xf0]  ;;  %v1193_v18 = vld [vmem:[#allocation3 + $0x1c] sm:$0xf]  ;;  %v893_v21 = vor.u32 %v1192_v14, %v890_v15  ;;  %v1268_v25 = vld [vmem:[#allocation8 + $0x30] sm:$0xff] }
  0x2a   :  { %670 = vmatpush.bf16.msra.mxu2 %v1215_v26  ;;  %v898_v19 = vld [vmem:[#allocation3 + $0x38] sm:$0xf0]  ;;  %v897_v22 = vor.u32 %v1197_v17, %v896_v16  ;;  %v1267_v26 = vld [vmem:[#allocation8 + $0x28] sm:$0xff]  ;;  %v1262_v35 = vld [vmem:[#allocation8] sm:$0xff] }
  0x2b   :  { %684 = vmatpush.bf16.msra.mxu3 %v1223_v27  ;;  %v901_v23 = vor.u32 %v1193_v18, %v898_v19  ;;  %v1269_v24 = vld [vmem:[#allocation8 + $0x38] sm:$0xff]  ;;  %v1266_v27 = vld [vmem:[#allocation8 + $0x20] sm:$0xff] }
  0x2c   :  { %643 = vmatpush.bf16.msra.mxu0 %v1198_v28  ;;  %v1265_v28 = vld [vmem:[#allocation8 + $0x18] sm:$0xff] }
  0x2d   :  { %657 = vmatpush.bf16.msra.mxu1 %v1206_v29  ;;  %v1264_v29 = vld [vmem:[#allocation8 + $0x10] sm:$0xff] }
  0x2e   :  { %671 = vmatpush.bf16.msra.mxu2 %v1214_v30 }
  0x2f   :  { %685 = vmatpush.bf16.msra.mxu3 %v1222_v31  ;;  %644 = vmatmul.bf16.vlgmr.msra.gmra.mxu0 %v873_v46 }
  0x30   :  { %692 = vmatpush.bf16.msrb.mxu0 %v1237_v32  ;;  %658 = vmatmul.bf16.vlgmr.msra.gmra.mxu1 %v877_v47  ;;  %v1263_v32 = vld [vmem:[#allocation8 + $0x8] sm:$0xff] }
  0x31   :  { %706 = vmatpush.bf16.msrb.mxu1 %v1245_v33  ;;  %672 = vmatmul.bf16.vlgmr.msra.gmra.mxu2 %v881_v44 }
  0x32   :  { %720 = vmatpush.bf16.msrb.mxu2 %v1253_v42  ;;  %686 = vmatmul.bf16.vlgmr.msra.gmra.mxu3 %v885_v45 }
  0x33   :  { %734 = vmatpush.bf16.msrb.mxu3 %v1261_v43 }
  0x34   :  { %693 = vmatpush.bf16.msrb.mxu0 %v1236_v48 }
  0x35   :  { %707 = vmatpush.bf16.msrb.mxu1 %v1244_v49 }
  0x36   :  { %721 = vmatpush.bf16.msrb.mxu2 %v1252_v50 }
  0x37   :  { %735 = vmatpush.bf16.msrb.mxu3 %v1260_v51 }
  0x38   :  { %694 = vmatpush.bf16.msrb.mxu0 %v1235_v52 }
  0x39   :  { %708 = vmatpush.bf16.msrb.mxu1 %v1243_v53 }
  0x3a   :  { %722 = vmatpush.bf16.msrb.mxu2 %v1251_v54 }
  0x3b   :  { %736 = vmatpush.bf16.msrb.mxu3 %v1259_v55 }
  0x3c   :  { %695 = vmatpush.bf16.msrb.mxu0 %v1234_v56 }
  0x3d   :  { %709 = vmatpush.bf16.msrb.mxu1 %v1242_v57  ;;  %v1280_v57 = vld [vmem:[%s1444_s2] ss:$0 sm:$0xff]  ;;  %s854_s2 = sshll.u32 %s1391_s13, 4  ;;  %s855_s2 = int_to_ptr.vmem [resolvable:$true] %s854_s2 }
  0x3e   :  { %723 = vmatpush.bf16.msrb.mxu2 %v1250_v58 }
  0x3f   :  { %737 = vmatpush.bf16.msrb.mxu3 %v1258_v59 }
  0x40   :  { %696 = vmatpush.bf16.msrb.mxu0 %v1233_v60 }
  0x41   :  { %710 = vmatpush.bf16.msrb.mxu1 %v1241_v61 }
  0x42   :  { %724 = vmatpush.bf16.msrb.mxu2 %v1249_v62 }
  0x43   :  { %738 = vmatpush.bf16.msrb.mxu3 %v1257_v63 }
  0x44   :  { %697 = vmatpush.bf16.msrb.mxu0 %v1232_v0 }
  0x45   :  { %711 = vmatpush.bf16.msrb.mxu1 %v1240_v1 }
  0x46   :  { %725 = vmatpush.bf16.msrb.mxu2 %v1248_v2 }
  0x47   :  { %739 = vmatpush.bf16.msrb.mxu3 %v1256_v3 }
  0x48   :  { %698 = vmatpush.bf16.msrb.mxu0 %v1231_v4  ;;  %v1281_v4 = vld [vmem:[%s1446_s4] ss:$0 sm:$0xff] }
  0x49   :  { %712 = vmatpush.bf16.msrb.mxu1 %v1239_v5 }
  0x4a   :  { %726 = vmatpush.bf16.msrb.mxu2 %v1247_v6 }
  0x4b   :  { %740 = vmatpush.bf16.msrb.mxu3 %v1255_v7 }
  0x4c   :  { %699 = vmatpush.bf16.msrb.mxu0 %v1230_v8 }
  0x4d   :  { %713 = vmatpush.bf16.msrb.mxu1 %v1238_v9 }
  0x4e   :  { %727 = vmatpush.bf16.msrb.mxu2 %v1246_v10 }
  0x4f   :  { %741 = vmatpush.bf16.msrb.mxu3 %v1254_v11  ;;  %700 = vmatmul.bf16.vlgmr.msrb.gmra.mxu0 %v889_v20 }
  0x50   :  { %714 = vmatmul.bf16.vlgmr.msrb.gmra.mxu1 %v893_v21  ;;  %834 = vmatpush.bf16.msra.mxu0 %v1269_v24 }
  0x51   :  { %728 = vmatmul.bf16.vlgmr.msrb.gmra.mxu2 %v897_v22 }
  0x52   :  { %742 = vmatmul.bf16.vlgmr.msrb.gmra.mxu3 %v901_v23 }
  0x54   :  { %835 = vmatpush.bf16.msra.mxu0 %v1268_v25 }
  0x58   :  { %836 = vmatpush.bf16.msra.mxu0 %v1267_v26 }
  0x5c   :  { %837 = vmatpush.bf16.msra.mxu0 %v1266_v27 }
  0x60   :  { %838 = vmatpush.bf16.msra.mxu0 %v1265_v28 }
  0x64   :  { %839 = vmatpush.bf16.msra.mxu0 %v1264_v29 }
  0x68   :  { %840 = vmatpush.bf16.msra.mxu0 %v1263_v32 }
  0x6c   :  { %841 = vmatpush.bf16.msra.mxu0 %v1262_v35 }
  0xac   :  { %v645_v30 = vpop.f32.mrf.mxu0 }
  0xad   :  { %v659_v31 = vpop.f32.mrf.mxu1 }
  0xae   :  { %v660_v37 = vadd.f32 %v659_v31, %v645_v30 }
  0xb4   :  { %v673_v33 = vpop.f32.mrf.mxu2  ;;  %v647_v36 = vpop.f32.mrf.mxu0 }
  0xb5   :  { %v687_v34 = vpop.f32.mrf.mxu3  ;;  %v661_v38 = vpop.f32.mrf.mxu1  ;;  %v674_v39 = vadd.f32 %v673_v33, %v660_v37 }
  0xb6   :  { %v662_v42 = vadd.f32 %v661_v38, %v647_v36 }
  0xb7   :  { %v688_v44 = vadd.f32 %v687_v34, %v674_v39 }
  0xbc   :  { %v675_v40 = vpop.f32.mrf.mxu2 }
  0xbd   :  { %v689_v41 = vpop.f32.mrf.mxu3  ;;  %v676_v46 = vadd.f32 %v675_v40, %v662_v42 }
  0xbf   :  { %v690_v50 = vadd.f32 %v689_v41, %v676_v46 }
  0xcc   :  { %v701_v43 = vpop.f32.mrf.mxu0 }
  0xcd   :  { %v715_v45 = vpop.f32.mrf.mxu1  ;;  %v702_v47 = vadd.f32 %v701_v43, %v688_v44 }
  0xcf   :  { %v716_v51 = vadd.f32 %v715_v45, %v702_v47 }
  0xd4   :  { %v729_v48 = vpop.f32.mrf.mxu2  ;;  %v703_v52 = vpop.f32.mrf.mxu0 }
  0xd5   :  { %v743_v49 = vpop.f32.mrf.mxu3  ;;  %v730_v53 = vadd.f32 %v729_v48, %v716_v51  ;;  %v704_v54 = vadd.f32 %v703_v52, %v690_v50  ;;  %v717_v55 = vpop.f32.mrf.mxu1 }
  0xd7   :  { %v744_v56 = vadd.f32 %v743_v49, %v730_v53  ;;  %v718_v58 = vadd.f32 %v717_v55, %v704_v54 }
  0xd9   :  { %v761_v62 = vadd.f32 %v1280_v57, %v744_v56 }
  0xdb   :  { %v763_v1 = vmax.f32 %v761_v62, 0.0 }
  0xdc   :  { %v731_v59 = vpop.f32.mrf.mxu2 }
  0xdd   :  { %v732_v60 = vadd.f32 %v731_v59, %v718_v58  ;;  %v745_v61 = vpop.f32.mrf.mxu3 }
  0xdf   :  { %v746_v63 = vadd.f32 %v745_v61, %v732_v60 }
  0xe1   :  { %v762_v0 = vadd.f32 %v1280_v57, %v746_v63 }
  0xe3   :  { %v764_v2 = vmax.f32 %v762_v0, 0.0 }
  0xe5   :  { %v765_v3 = vpack.c.bf16 %v764_v2, %v763_v1 }
  0xe7   :  { %842 = vmatmul.bf16.vlgmr.msra.gmra.mxu0 %v765_v3 }
 0x164   :  { %v843_v5 = vpop.f32.mrf.mxu0 }
 0x165   :  { %v844_v6 = vadd.f32 %v1281_v4, %v843_v5 }
 0x167   :  { %848 = vst [vmem:[#allocation9] sm:$0xff] %v844_v6 }
 0x16c   :  { %v845_v7 = vpop.f32.mrf.mxu0 }
 0x16d   :  { %v846_v8 = vadd.f32 %v1281_v4, %v845_v7 }
 0x16f   :  { %849 = vst [vmem:[#allocation9 + $0x8] sm:$0xff] %v846_v8 }
 0x170   :  { %862 = dma.vmem_to_hbm [thread:$0]  %s855_s2, 256, %s857_s16, [#allocation5], %s1392_s17, %s1392_s17, %s1393_s18  }
 0x171   :  { %1382 = dma.done.wait [#allocation5], 256  }
 0x172   :  { %1383 = vsyncadd [#allocation5], 4294967040 }
 0x173   :  { %867 = vsyncpa [#allocation4], 1 }
 0x174   :  { %868 = vsyncpa [#allocation7], 1 }
 0x175   :  { %869 = vsyncpa [#allocation5], 1 }

</bundles_post_ra>
